<compile_context>
chip_gen: v6e
topology: v6e:2x2x1
jax: 0.10.0
libtpu: 0.0.40
codegen_flags: <defaults>
</compile_context>

<pallas_src>
import functools
import math

import jax
import jax.numpy as jnp
from jax import lax
from jax.experimental import pallas as pl
from jax.experimental.pallas import tpu as pltpu


def _round_up(x: int, m: int) -> int:
    return ((x + m - 1) // m) * m


def _proxy_linear_kernel(x_ref, w_ref, o_ref, acc_ref):
    # x_ref: (tm, tk), w_ref: (tn, tk) [weight kept in (N, K) layout],
    # o_ref: (tm, tn), acc_ref: (tm, tn) f32 accumulator, resident over K.
    @pl.when(pl.program_id(2) == 0)
    def _init():
        acc_ref[...] = jnp.zeros_like(acc_ref)

    acc_ref[...] += lax.dot_general(
        x_ref[...],
        w_ref[...],
        dimension_numbers=(((1,), (1,)), ((), ())),  # contract K of both tiles
        preferred_element_type=jnp.float32,
    )

    @pl.when(pl.program_id(2) == pl.num_programs(2) - 1)
    def _store():
        o_ref[...] = acc_ref[...].astype(o_ref.dtype)


@functools.partial(jax.jit, static_argnames=("tm", "tn", "tk"))
def proxy_linear(x, weight, *, tm=256, tn=256, tk=512):
    """x: (M, K) = (batch, in_features), weight: (N, K) = (out_features, in_features).

    Returns (output (M, N), output_high = output[:N//2]).
    """
    M, K = x.shape
    N, K2 = weight.shape
    assert K == K2, "in_features mismatch"
    # NOTE: for tiny problems (like the smoke test below) plain jnp.dot beats
    # any custom kernel; the Pallas path is kept unconditional here so the
    # kernel itself is exercised.

    # Clip tile sizes to the (aligned) problem size; keep (8, 128) alignment.
    tm = min(tm, _round_up(M, 8))      # sublane-aligned
    tn = min(tn, _round_up(N, 128))    # lane-dense output tile
    tk = min(tk, _round_up(K, 128))

    Mp, Np, Kp = _round_up(M, tm), _round_up(N, tn), _round_up(K, tk)
    x_p = x if (Mp == M and Kp == K) else jnp.pad(x, ((0, Mp - M), (0, Kp - K)))
    w_p = (weight if (Np == N and Kp == K)
           else jnp.pad(weight, ((0, Np - N), (0, Kp - K))))

    grid = (Mp // tm, Np // tn, Kp // tk)

    itemsize = jnp.dtype(x.dtype).itemsize
    # double-buffered input/output tiles + f32 accumulator, with headroom;
    # clamp to 64 MiB so tiles also fit v7x's smaller physical VMEM.
    vmem_needed = 2 * (tm * tk + tn * tk + tm * tn) * itemsize + tm * tn * 4
    vmem_limit = int(min(max(2 * vmem_needed, 32 * 1024 * 1024),
                         64 * 1024 * 1024))

    out_p = pl.pallas_call(
        _proxy_linear_kernel,
        out_shape=jax.ShapeDtypeStruct((Mp, Np), x.dtype),
        grid_spec=pltpu.PrefetchScalarGridSpec(
            num_scalar_prefetch=0,
            grid=grid,
            in_specs=[
                pl.BlockSpec((tm, tk), lambda i, j, k: (i, k)),   # x tiles
                pl.BlockSpec((tn, tk), lambda i, j, k: (j, k)),   # weight tiles (N, K)
            ],
            out_specs=pl.BlockSpec((tm, tn), lambda i, j, k: (i, j)),
            scratch_shapes=[pltpu.VMEM((tm, tn), jnp.float32)],
        ),
        compiler_params=pltpu.CompilerParams(
            dimension_semantics=("parallel", "parallel", "arbitrary"),
            vmem_limit_bytes=vmem_limit,
        ),
    )(x_p, w_p)

    output = out_p[:M, :N] if (Mp != M or Np != N) else out_p

    # PyTorch: output_high = output[:out_features // 2]  — batch-dim row
    # slice, which (like Python slicing) clamps when batch < out_features//2.
    weight_size = N // 2
    output_high = output[:weight_size]
    return output, output_high


def init_proxy_linear_weight(key, in_features, out_features):
    # Matches nn.init.kaiming_uniform_(w, a=sqrt(5)):
    # bound = sqrt(6 / ((1 + a^2) * fan_in)) = 1 / sqrt(fan_in)
    bound = 1.0 / math.sqrt(in_features)
    return jax.random.uniform(
        key, (out_features, in_features), dtype=jnp.float32,
        minval=-bound, maxval=bound,
    )


if __name__ == "__main__":
    key = jax.random.PRNGKey(0)
    k_x1, k_w1, k_x2, k_w2 = jax.random.split(key, 4)

    # --- small smoke test (batch >= out_features//2 so the PyTorch row slice
    #     yields the full (out_features//2, out_features) block) -------------
    batch, in_features, out_features = 32, 64, 32
    x = jax.random.normal(k_x1, (batch, in_features), dtype=jnp.float32)
    w = init_proxy_linear_weight(k_w1, in_features, out_features)

    output, output_high = proxy_linear(x, w)
    jax.block_until_ready((output, output_high))

    ref = jnp.dot(x, w.T, precision=lax.Precision.HIGHEST)
    weight_size = out_features // 2
    assert output.shape == (batch, out_features)
    assert output_high.shape == (min(batch, weight_size), out_features)
    assert jnp.allclose(output, ref, atol=1e-3, rtol=1e-3)
    assert jnp.allclose(output_high, ref[:weight_size], atol=1e-3, rtol=1e-3)

    # --- larger check exercising a multi-block grid (N and K tiling) --------
    M2, K2, N2 = 256, 1024, 512
    x2 = jax.random.normal(k_x2, (M2, K2), dtype=jnp.float32)
    w2 = init_proxy_linear_weight(k_w2, K2, N2)
    out2, out2_high = proxy_linear(x2, w2)
    jax.block_until_ready((out2, out2_high))

    ref2 = jnp.dot(x2, w2.T, precision=lax.Precision.HIGHEST)
    assert out2.shape == (M2, N2)
    assert out2_high.shape == (min(M2, N2 // 2), N2)
    assert jnp.allclose(out2, ref2, atol=2e-3, rtol=2e-3)
    assert jnp.allclose(out2_high, ref2[: N2 // 2], atol=2e-3, rtol=2e-3)

    print("KERNEL_OK")
</pallas_src>

<mosaic_0001>
module attributes {stable_mosaic.version = 11 : i64} {
  func.func @_proxy_linear_kernel(%arg0: i32, %arg1: i32, %arg2: i32, %arg3: memref<32x128xf32, #tpu.memory_space<vmem>>, %arg4: memref<128x128xf32, #tpu.memory_space<vmem>>, %arg5: memref<32x128xf32, #tpu.memory_space<vmem>>, %arg6: memref<32x128xf32, #tpu.memory_space<vmem>>) attributes {dimension_semantics = [#tpu.dimension_semantics<parallel>, #tpu.dimension_semantics<parallel>, #tpu.dimension_semantics<arbitrary>], iteration_bounds = array<i64: 1, 1, 1>, scalar_prefetch = 0 : i64, scratch_operands = 1 : i64, tpu.core_type = #tpu.core_type<tc>, window_params = [{transform_indices = @transform_0, window_bounds = array<i64: 32, 128>}, {transform_indices = @transform_1, window_bounds = array<i64: 128, 128>}, {transform_indices = @transform_2, window_bounds = array<i64: 32, 128>}]} {
    %c0_i32 = arith.constant 0 : i32
    %0 = arith.cmpi eq, %arg2, %c0_i32 : i32
    %1 = arith.extui %0 : i1 to i32
    %c0_i32_0 = arith.constant 0 : i32
    %2 = arith.cmpi ne, %1, %c0_i32_0 : i32
    scf.if %2 {
      %cst_10 = arith.constant 0.000000e+00 : f32
      %12 = vector.broadcast %cst_10 : f32 to vector<32x128xf32>
      %c0_11 = arith.constant 0 : index
      %c0_12 = arith.constant 0 : index
      %13 = vector.load %arg6[%c0_11, %c0_12] : memref<32x128xf32, #tpu.memory_space<vmem>>, vector<32x128xf32>
      tpu.vector_store %arg6[%c0_11, %c0_12], %12 {strides = array<i32>} : memref<32x128xf32, #tpu.memory_space<vmem>>, vector<32x128xf32>,
    } else {
    }
    %c0 = arith.constant 0 : index
    %c0_1 = arith.constant 0 : index
    %3 = vector.load %arg6[%c0, %c0_1] : memref<32x128xf32, #tpu.memory_space<vmem>>, vector<32x128xf32>
    %c0_2 = arith.constant 0 : index
    %c0_3 = arith.constant 0 : index
    %4 = vector.load %arg3[%c0_2, %c0_3] : memref<32x128xf32, #tpu.memory_space<vmem>>, vector<32x128xf32>
    %c0_4 = arith.constant 0 : index
    %c0_5 = arith.constant 0 : index
    %5 = vector.load %arg4[%c0_4, %c0_5] : memref<128x128xf32, #tpu.memory_space<vmem>>, vector<128x128xf32>
    %cst = arith.constant dense<0.000000e+00> : vector<32x128xf32>
    %6 = tpu.matmul %4, %5, %cst {dimension_numbers = #tpu.dot_dimension_numbers<[1], [1], [0], [0], [0, 0, 1, 0], [], []>} : vector<32x128xf32>, vector<128x128xf32>, vector<32x128xf32> -> vector<32x128xf32>
    %7 = arith.addf %3, %6 : vector<32x128xf32>
    %c0_6 = arith.constant 0 : index
    %c0_7 = arith.constant 0 : index
    %8 = vector.load %arg6[%c0_6, %c0_7] : memref<32x128xf32, #tpu.memory_space<vmem>>, vector<32x128xf32>
    tpu.vector_store %arg6[%c0_6, %c0_7], %7 {strides = array<i32>} : memref<32x128xf32, #tpu.memory_space<vmem>>, vector<32x128xf32>,
    %c0_i32_8 = arith.constant 0 : i32
    %9 = arith.cmpi eq, %arg2, %c0_i32_8 : i32
    %10 = arith.extui %9 : i1 to i32
    %c0_i32_9 = arith.constant 0 : i32
    %11 = arith.cmpi ne, %10, %c0_i32_9 : i32
    scf.if %11 {
      %c0_10 = arith.constant 0 : index
      %c0_11 = arith.constant 0 : index
      %12 = vector.load %arg6[%c0_10, %c0_11] : memref<32x128xf32, #tpu.memory_space<vmem>>, vector<32x128xf32>
      %c0_12 = arith.constant 0 : index
      %c0_13 = arith.constant 0 : index
      %13 = vector.load %arg5[%c0_12, %c0_13] : memref<32x128xf32, #tpu.memory_space<vmem>>, vector<32x128xf32>
      tpu.vector_store %arg5[%c0_12, %c0_13], %12 {strides = array<i32>} : memref<32x128xf32, #tpu.memory_space<vmem>>, vector<32x128xf32>,
    } else {
    }
    return
  }
  func.func @transform_0(%arg0: i32, %arg1: i32, %arg2: i32) -> (i32, i32) {
    %c0_i32 = arith.constant 0 : i32
    return %arg0, %arg2 : i32, i32
  }
  func.func @transform_1(%arg0: i32, %arg1: i32, %arg2: i32) -> (i32, i32) {
    %c0_i32 = arith.constant 0 : i32
    return %arg1, %arg2 : i32, i32
  }
  func.func @transform_2(%arg0: i32, %arg1: i32, %arg2: i32) -> (i32, i32) {
    %c0_i32 = arith.constant 0 : i32
    return %arg0, %arg1 : i32, i32
  }
}

</mosaic_0001>

<bundles_post_ra>
// kernel: proxy_linear.1
= control target key start
LH: loop header
LB: loop body
LE: loop exit
PB: predicated region body
PF: predicated region fallthrough
CT: control target
= control target key end

     0   :  { %s328_s1 = inlined_call_operand.vmem [shape: f32[128,128], index: 1, kind: input, shape index: {}]   ;;  %s329_s0 = inlined_call_operand.vmem [shape: f32[32,128], index: 0, kind: input, shape index: {}]   ;;  %s330_s2 = inlined_call_operand.vmem [shape: f32[32,128], index: 2, kind: output, shape index: {}]  }
   0x1   :  { %v42_v0 = vld [vmem:[%s328_s1 + $0x78] sm:$0xff]  ;;  %v41_v1 = vld [vmem:[%s328_s1 + $0x70] sm:$0xff]  ;;  %v40_v2 = vld [vmem:[%s328_s1 + $0x68] sm:$0xff] }
   0x2   :  { %171 = vmatprep.subr.mxu0 %v42_v0  ;;  %209 = vmatprep.subr.mxu1 %v42_v0  ;;  %v23_v3 = vld [vmem:[%s329_s0] sm:$0xff]  ;;  %v25_v4 = vld [vmem:[%s329_s0 + $0x10] sm:$0xff]  ;;  %v38_v6 = vld [vmem:[%s328_s1 + $0x58] sm:$0xff] }
   0x3   :  { %172 = vmatpush3.xpose.msra.mxu0 %v42_v0  ;;  %225 = vmatpush3.xpose.msra.mxu1 %v42_v0  ;;  %v39_v5 = vld [vmem:[%s328_s1 + $0x60] sm:$0xff]  ;;  %v37_v7 = vld [vmem:[%s328_s1 + $0x50] sm:$0xff]  ;;  %v36_v8 = vld [vmem:[%s328_s1 + $0x48] sm:$0xff] }
   0x4   :  { %173 = vmatprep.subr.mxu0 %v41_v1  ;;  %210 = vmatprep.subr.mxu1 %v41_v1  ;;  %v35_v9 = vld [vmem:[%s328_s1 + $0x40] sm:$0xff]  ;;  %v34_v10 = vld [vmem:[%s328_s1 + $0x38] sm:$0xff]  ;;  %v33_v11 = vld [vmem:[%s328_s1 + $0x30] sm:$0xff] }
   0x5   :  { %203 = vmatprep.mubr.f32.mxu0 %v23_v3  ;;  %206 = vmatprep.mubr.f32.mxu1 %v25_v4  ;;  %v32_v12 = vld [vmem:[%s328_s1 + $0x28] sm:$0xff]  ;;  %v31_v13 = vld [vmem:[%s328_s1 + $0x20] sm:$0xff]  ;;  %v30_v14 = vld [vmem:[%s328_s1 + $0x18] sm:$0xff] }
   0x6   :  { %v29_v15 = vld [vmem:[%s328_s1 + $0x10] sm:$0xff]  ;;  %v28_v16 = vld [vmem:[%s328_s1 + $0x8] sm:$0xff]  ;;  %v27_v17 = vld [vmem:[%s328_s1] sm:$0xff] }
   0x7   :  { %174 = vmatpush3.xpose.msra.mxu0 %v41_v1  ;;  %226 = vmatpush3.xpose.msra.mxu1 %v41_v1  ;;  %v24_v18 = vld [vmem:[%s329_s0 + $0x8] sm:$0xff]  ;;  %v26_v19 = vld [vmem:[%s329_s0 + $0x18] sm:$0xff] }
   0x8   :  { %175 = vmatprep.subr.mxu0 %v40_v2  ;;  %211 = vmatprep.subr.mxu1 %v40_v2 }
   0xb   :  { %176 = vmatpush3.xpose.msra.mxu0 %v40_v2  ;;  %227 = vmatpush3.xpose.msra.mxu1 %v40_v2 }
   0xc   :  { %177 = vmatprep.subr.mxu0 %v39_v5  ;;  %212 = vmatprep.subr.mxu1 %v39_v5 }
   0xf   :  { %178 = vmatpush3.xpose.msra.mxu0 %v39_v5  ;;  %228 = vmatpush3.xpose.msra.mxu1 %v39_v5 }
  0x10   :  { %179 = vmatprep.subr.mxu0 %v38_v6  ;;  %213 = vmatprep.subr.mxu1 %v38_v6 }
  0x13   :  { %180 = vmatpush3.xpose.msra.mxu0 %v38_v6  ;;  %229 = vmatpush3.xpose.msra.mxu1 %v38_v6 }
  0x14   :  { %181 = vmatprep.subr.mxu0 %v37_v7  ;;  %214 = vmatprep.subr.mxu1 %v37_v7 }
  0x17   :  { %182 = vmatpush3.xpose.msra.mxu0 %v37_v7  ;;  %230 = vmatpush3.xpose.msra.mxu1 %v37_v7 }
  0x18   :  { %183 = vmatprep.subr.mxu0 %v36_v8  ;;  %215 = vmatprep.subr.mxu1 %v36_v8 }
  0x1b   :  { %184 = vmatpush3.xpose.msra.mxu0 %v36_v8  ;;  %231 = vmatpush3.xpose.msra.mxu1 %v36_v8 }
  0x1c   :  { %185 = vmatprep.subr.mxu0 %v35_v9  ;;  %216 = vmatprep.subr.mxu1 %v35_v9 }
  0x1f   :  { %186 = vmatpush3.xpose.msra.mxu0 %v35_v9  ;;  %232 = vmatpush3.xpose.msra.mxu1 %v35_v9 }
  0x20   :  { %187 = vmatprep.subr.mxu0 %v34_v10  ;;  %217 = vmatprep.subr.mxu1 %v34_v10 }
  0x23   :  { %188 = vmatpush3.xpose.msra.mxu0 %v34_v10  ;;  %233 = vmatpush3.xpose.msra.mxu1 %v34_v10 }
  0x24   :  { %189 = vmatprep.subr.mxu0 %v33_v11  ;;  %218 = vmatprep.subr.mxu1 %v33_v11 }
  0x27   :  { %190 = vmatpush3.xpose.msra.mxu0 %v33_v11  ;;  %234 = vmatpush3.xpose.msra.mxu1 %v33_v11 }
  0x28   :  { %191 = vmatprep.subr.mxu0 %v32_v12  ;;  %219 = vmatprep.subr.mxu1 %v32_v12 }
  0x2b   :  { %192 = vmatpush3.xpose.msra.mxu0 %v32_v12  ;;  %235 = vmatpush3.xpose.msra.mxu1 %v32_v12 }
  0x2c   :  { %193 = vmatprep.subr.mxu0 %v31_v13  ;;  %220 = vmatprep.subr.mxu1 %v31_v13 }
  0x2f   :  { %194 = vmatpush3.xpose.msra.mxu0 %v31_v13  ;;  %236 = vmatpush3.xpose.msra.mxu1 %v31_v13 }
  0x30   :  { %195 = vmatprep.subr.mxu0 %v30_v14  ;;  %221 = vmatprep.subr.mxu1 %v30_v14 }
  0x33   :  { %196 = vmatpush3.xpose.msra.mxu0 %v30_v14  ;;  %237 = vmatpush3.xpose.msra.mxu1 %v30_v14 }
  0x34   :  { %197 = vmatprep.subr.mxu0 %v29_v15  ;;  %222 = vmatprep.subr.mxu1 %v29_v15 }
  0x37   :  { %198 = vmatpush3.xpose.msra.mxu0 %v29_v15  ;;  %238 = vmatpush3.xpose.msra.mxu1 %v29_v15 }
  0x38   :  { %199 = vmatprep.subr.mxu0 %v28_v16  ;;  %223 = vmatprep.subr.mxu1 %v28_v16 }
  0x3b   :  { %200 = vmatpush3.xpose.msra.mxu0 %v28_v16  ;;  %239 = vmatpush3.xpose.msra.mxu1 %v28_v16 }
  0x3c   :  { %201 = vmatprep.subr.mxu0 %v27_v17  ;;  %224 = vmatprep.subr.mxu1 %v27_v17 }
  0x3f   :  { %202 = vmatpush3.xpose.msra.mxu0 %v27_v17  ;;  %240 = vmatpush3.xpose.msra.mxu1 %v27_v17 }
  0x42   :  { %204 = vmatmul.mubr.f32.vlgmr.msra.gmra.mxu0 %v24_v18  ;;  %207 = vmatmul.mubr.f32.vlgmr.msra.gmra.mxu1 %v26_v19 }
 0x102   :  { %v205_v20 = vpop.f32.mrf.mxu0  ;;  %v208_v21 = vpop.f32.mrf.mxu1 }
 0x103   :  { %144 = vst [vmem:[%s330_s2 + $0x8] sm:$0xff] %v205_v20  ;;  %146 = vst [vmem:[%s330_s2 + $0x18] sm:$0xff] %v208_v21 }
 0x104   :  { %v109_v22 = vpop.f32.mrf.mxu0  ;;  %v119_v23 = vpop.f32.mrf.mxu1 }
 0x105   :  { %143 = vst [vmem:[%s330_s2] sm:$0xff] %v109_v22  ;;  %145 = vst [vmem:[%s330_s2 + $0x10] sm:$0xff] %v119_v23 }

</bundles_post_ra>
